<compile_context>
chip_gen: v7x
topology: tpu7x:2x2x1
jax: 0.10.0
libtpu: 0.0.40
codegen_flags: <defaults>
</compile_context>

<pallas_src>
import jax
import jax.numpy as jnp
from jax.experimental import pallas as pl
from jax.experimental.pallas import tpu as pltpu


def _round_up(n, m):
    return ((n + m - 1) // m) * m


def _physical_vmem_bytes(default=64 << 20):
    """Per-core VMEM capacity; conservative fallback if the query fails."""
    try:
        info = pltpu.get_tpu_info()
        return int(getattr(info, "vmem_capacity_bytes", default))
    except Exception:
        return default


def _ff_kernel(x_ref, w1_ref, b1_ref, w2_ref, b2_ref, o_ref, acc_ref):
    # x_ref:   (tm, D)      token tile (resident across the hidden-chunk axis)
    # w1_ref:  (D, 2*th)    fused [value | gate] W1 columns for this chunk
    # b1_ref:  (1, 2*th)    fused [value | gate] b1 for this chunk (f32)
    # w2_ref:  (th, D)      W2 rows for this chunk
    # b2_ref:  (1, D)       output bias (resident, f32)
    # acc_ref: (tm, D)      f32 accumulator scratch
    j = pl.program_id(1)

    # Fold b2 into the accumulator init: avoids a (tm, D) add per reduction step.
    @pl.when(j == 0)
    def _():
        acc_ref[...] = jnp.broadcast_to(b2_ref[...], acc_ref.shape)

    x = x_ref[...]  # already in compute dtype (cast done in the wrapper)

    # Single fused MXU pass over both GEGLU halves, f32 accumulation.
    hg = jnp.dot(x, w1_ref[...], preferred_element_type=jnp.float32) + b1_ref[...]
    th = hg.shape[-1] // 2
    h, g = hg[:, :th], hg[:, th:]

    # GEGLU with tanh-approximate gelu (tanh lowers to the EUP slot).
    act = h * jax.nn.gelu(g, approximate=True)

    # Second matmul: accumulate this hidden chunk's contribution.
    acc_ref[...] += jnp.dot(act.astype(w2_ref.dtype), w2_ref[...],
                            preferred_element_type=jnp.float32)

    @pl.when(j == pl.num_programs(1) - 1)
    def _():
        o_ref[...] = acc_ref[...].astype(o_ref.dtype)


def feed_forward(x, w1, b1, w2, b2, *, tm=None, th=None,
                 compute_dtype=jnp.bfloat16):
    """x: (B, S, D) -> (B, S, D).  Both matmuls + GEGLU run in one Pallas kernel.

    tm: token-tile rows; None -> 768 on 128 MiB-VMEM parts (v5e/v6e), 384 on
        64 MiB parts (v7x).
    th: hidden-dim chunk size (must divide H); None -> full residency (th=H)
        if the weights fit VMEM, otherwise the largest fitting chunk.
    compute_dtype: matmul-input dtype (default bf16; f32 accumulation kept).
    """
    B, S, D = x.shape
    H = w2.shape[0]
    assert w1.shape == (D, 2 * H) and w2.shape == (H, D)
    assert b1.shape == (2 * H,) and b2.shape == (D,)

    out_dtype = x.dtype
    w1 = w1.astype(compute_dtype)
    w2 = w2.astype(compute_dtype)
    wbytes = jnp.dtype(compute_dtype).itemsize
    cbytes = wbytes
    obytes = jnp.dtype(out_dtype).itemsize

    phys_vmem = _physical_vmem_bytes()

    # --- token tiling -------------------------------------------------------
    M = B * S
    M8 = _round_up(M, 8)
    if tm is None:
        tm = 768 if phys_vmem >= (96 << 20) else 384
    tm = max(8, _round_up(tm, 8))
    tm_eff = min(tm, M8)
    grid_m = pl.cdiv(M8, tm_eff)

    # --- hidden-dim chunking ------------------------------------------------
    def _footprint(tm_, th_):
        return (
            2 * tm_ * D * cbytes          # x tile (double buffered)
            + 2 * tm_ * D * obytes        # out tile
            + 2 * D * (2 * th_) * wbytes  # W1 chunk
            + 2 * th_ * D * wbytes        # W2 chunk
            + 2 * (2 * th_) * 4           # b1 chunk
            + 2 * D * 4                   # b2
            + tm_ * D * 4                 # f32 accumulator scratch
            + tm_ * (2 * th_) * 4         # hg intermediate (f32)
            + tm_ * th_ * 4               # act intermediate (f32)
            + tm_ * th_ * cbytes          # act cast for 2nd matmul
        )

    if th is None:
        candidates = [H] + [c for c in (2048, 1024, 512, 256, 128)
                            if c < H and H % c == 0]
        th = candidates[-1]
        for cand in candidates:
            if _footprint(tm_eff, cand) <= int(0.75 * phys_vmem):
                th = cand
                break
    assert H % th == 0, "th must divide the hidden dim"
    n_chunks = H // th

    # --- pre-reorder W1/b1 so each chunk's value+gate columns are contiguous -
    w1_r = w1.reshape(D, 2, n_chunks, th).transpose(0, 2, 1, 3).reshape(D, 2 * H)
    b1_r = (b1.astype(jnp.float32).reshape(2, n_chunks, th)
            .transpose(1, 0, 2).reshape(1, 2 * H))
    b2_2d = b2.reshape(1, D).astype(jnp.float32)

    # --- activations: cast in the wrapper, pad at most 7 rows ---------------
    x2d = x.reshape(M, D).astype(compute_dtype)
    if M8 != M:
        x2d = jnp.pad(x2d, ((0, M8 - M), (0, 0)))

    grid = (grid_m, n_chunks)

    # --- VMEM budget / limit (clamped below physical VMEM) ------------------
    vmem_bytes = _footprint(tm_eff, th)
    vmem_limit = min(max(int(vmem_bytes * 1.5) + (4 << 20), 32 << 20),
                     phys_vmem - (2 << 20))

    weight_passes = grid_m if n_chunks > 1 else 1  # constant index -> 1 fetch
    cost = pl.CostEstimate(
        flops=6 * M8 * D * H,                      # 2*M*D*2H + 2*M*H*D
        transcendentals=M8 * H,                    # one tanh per gelu element
        bytes_accessed=(M8 * D * cbytes            # x
                        + weight_passes * 3 * D * H * wbytes
                        + (2 * H + D) * 4          # biases
                        + M8 * D * obytes),        # out
    )

    out2d = pl.pallas_call(
        _ff_kernel,
        out_shape=jax.ShapeDtypeStruct((M8, D), out_dtype),
        grid_spec=pltpu.PrefetchScalarGridSpec(
            num_scalar_prefetch=0,
            grid=grid,
            in_specs=[
                pl.BlockSpec((tm_eff, D), lambda i, j: (i, 0)),   # x tile
                pl.BlockSpec((D, 2 * th), lambda i, j: (0, j)),   # W1 chunk (fused halves)
                pl.BlockSpec((1, 2 * th), lambda i, j: (0, j)),   # b1 chunk
                pl.BlockSpec((th, D), lambda i, j: (j, 0)),       # W2 chunk
                pl.BlockSpec((1, D), lambda i, j: (0, 0)),        # b2 (resident)
            ],
            out_specs=pl.BlockSpec((tm_eff, D), lambda i, j: (i, 0)),
            scratch_shapes=[pltpu.VMEM((tm_eff, D), jnp.float32)],
        ),
        compiler_params=pltpu.CompilerParams(
            dimension_semantics=("parallel", "arbitrary"),
            vmem_limit_bytes=int(vmem_limit),
        ),
        cost_estimate=cost,
    )(x2d, w1_r, b1_r, w2, b2_2d)

    if M8 != M:
        out2d = out2d[:M]
    return out2d.reshape(B, S, D)


def _reference(x, w1, b1, w2, b2):
    H = w2.shape[0]
    proj = jnp.einsum("bsd,dk->bsk", x, w1) + b1
    h, gate = proj[..., :H], proj[..., H:]
    act = h * jax.nn.gelu(gate, approximate=True)
    return jnp.einsum("bsh,hd->bsd", act, w2) + b2


if __name__ == "__main__":
    B, S, D = 2, 8, 64          # small shapes: batch=2, seq=8, dim=64
    MULT = 4
    H = D * MULT                # inner hidden = 256

    key = jax.random.PRNGKey(0)
    kx, k1, k2, k3, k4 = jax.random.split(key, 5)

    x = jax.random.normal(kx, (B, S, D), dtype=jnp.float32)
    w1 = jax.random.normal(k1, (D, 2 * H), dtype=jnp.float32) * 0.05
    b1 = jax.random.normal(k2, (2 * H,), dtype=jnp.float32) * 0.01
    w2 = jax.random.normal(k3, (H, D), dtype=jnp.float32) * 0.05
    b2 = jax.random.normal(k4, (D,), dtype=jnp.float32) * 0.01

    ref = _reference(x, w1, b1, w2, b2)

    # Default path: bf16 compute (f32 accumulation), full weight residency.
    out = jax.block_until_ready(feed_forward(x, w1, b1, w2, b2))
    assert out.shape == (B, S, D)
    assert jnp.allclose(out, ref, atol=5e-2, rtol=5e-2)

    # f32 compute, th=128 -> exercises the 2-chunk hidden-dim reduction path.
    out_f32 = jax.block_until_ready(
        feed_forward(x, w1, b1, w2, b2, th=128, compute_dtype=jnp.float32))
    assert jnp.allclose(out_f32, ref, atol=1e-4, rtol=1e-4)

    print("KERNEL_OK")
</pallas_src>

<mosaic_0001>
module attributes {stable_mosaic.version = 11 : i64} {
  func.func @_ff_kernel(%arg0: i32, %arg1: i32, %arg2: memref<16x64xbf16, #tpu.memory_space<vmem>>, %arg3: memref<64x512xbf16, #tpu.memory_space<vmem>>, %arg4: memref<1x512xf32, #tpu.memory_space<vmem>>, %arg5: memref<256x64xbf16, #tpu.memory_space<vmem>>, %arg6: memref<1x64xf32, #tpu.memory_space<vmem>>, %arg7: memref<16x64xf32, #tpu.memory_space<vmem>>, %arg8: memref<16x64xf32, #tpu.memory_space<vmem>>) attributes {dimension_semantics = [#tpu.dimension_semantics<parallel>, #tpu.dimension_semantics<arbitrary>], iteration_bounds = array<i64: 1, 1>, scalar_prefetch = 0 : i64, scratch_operands = 1 : i64, tpu.core_type = #tpu.core_type<tc>, window_params = [{transform_indices = @transform_0, window_bounds = array<i64: 16, 64>}, {transform_indices = @transform_1, window_bounds = array<i64: 64, 512>}, {transform_indices = @transform_2, window_bounds = array<i64: 1, 512>}, {transform_indices = @transform_3, window_bounds = array<i64: 256, 64>}, {pipeline_mode = #tpu.pipeline_mode<synchronous>, transform_indices = @transform_4, window_bounds = array<i64: 1, 64>}, {transform_indices = @transform_5, window_bounds = array<i64: 16, 64>}]} {
    %c0_i32 = arith.constant 0 : i32
    %0 = arith.cmpi eq, %arg1, %c0_i32 : i32
    %1 = arith.extui %0 : i1 to i32
    %c0_i32_0 = arith.constant 0 : i32
    %2 = arith.cmpi ne, %1, %c0_i32_0 : i32
    scf.if %2 {
      %c0_19 = arith.constant 0 : index
      %c0_20 = arith.constant 0 : index
      %34 = vector.load %arg6[%c0_19, %c0_20] : memref<1x64xf32, #tpu.memory_space<vmem>>, vector<1x64xf32>
      %35 = vector.shape_cast %34 : vector<1x64xf32> to vector<1x64xf32>
      %36 = vector.broadcast %35 : vector<1x64xf32> to vector<16x64xf32>
      %c0_21 = arith.constant 0 : index
      %c0_22 = arith.constant 0 : index
      %37 = vector.load %arg8[%c0_21, %c0_22] : memref<16x64xf32, #tpu.memory_space<vmem>>, vector<16x64xf32>
      tpu.vector_store %arg8[%c0_21, %c0_22], %36 {strides = array<i32>} : memref<16x64xf32, #tpu.memory_space<vmem>>, vector<16x64xf32>,
    } else {
    }
    %c0 = arith.constant 0 : index
    %c0_1 = arith.constant 0 : index
    %3 = vector.load %arg2[%c0, %c0_1] : memref<16x64xbf16, #tpu.memory_space<vmem>>, vector<16x64xbf16>
    %c0_2 = arith.constant 0 : index
    %c0_3 = arith.constant 0 : index
    %4 = vector.load %arg3[%c0_2, %c0_3] : memref<64x512xbf16, #tpu.memory_space<vmem>>, vector<64x512xbf16>
    %cst = arith.constant dense<0.000000e+00> : vector<16x512xf32>
    %5 = tpu.matmul %3, %4, %cst {dimension_numbers = #tpu.dot_dimension_numbers<[1], [0], [0], [1], [0, 0, 1, 1], [], []>} : vector<16x64xbf16>, vector<64x512xbf16>, vector<16x512xf32> -> vector<16x512xf32>
    %c0_4 = arith.constant 0 : index
    %c0_5 = arith.constant 0 : index
    %6 = vector.load %arg4[%c0_4, %c0_5] : memref<1x512xf32, #tpu.memory_space<vmem>>, vector<1x512xf32>
    %7 = vector.broadcast %6 : vector<1x512xf32> to vector<16x512xf32>
    %8 = arith.addf %5, %7 : vector<16x512xf32>
    %9 = vector.extract_strided_slice %8 {offsets = [0, 0], sizes = [16, 256], strides = [1, 1]} : vector<16x512xf32> to vector<16x256xf32>
    %10 = vector.extract_strided_slice %8 {offsets = [0, 256], sizes = [16, 256], strides = [1, 1]} : vector<16x512xf32> to vector<16x256xf32>
    %11 = arith.mulf %10, %10 : vector<16x256xf32>
    %12 = arith.mulf %10, %11 : vector<16x256xf32>
    %cst_6 = arith.constant 4.471500e-02 : f32
    %13 = vector.broadcast %cst_6 : f32 to vector<16x256xf32>
    %14 = arith.mulf %13, %12 : vector<16x256xf32>
    %15 = arith.addf %10, %14 : vector<16x256xf32>
    %cst_7 = arith.constant 0.797884583 : f32
    %16 = vector.broadcast %cst_7 : f32 to vector<16x256xf32>
    %17 = arith.mulf %16, %15 : vector<16x256xf32>
    %18 = math.tanh %17 : vector<16x256xf32>
    %cst_8 = arith.constant 1.000000e+00 : f32
    %19 = vector.broadcast %cst_8 : f32 to vector<16x256xf32>
    %20 = arith.addf %19, %18 : vector<16x256xf32>
    %cst_9 = arith.constant 5.000000e-01 : f32
    %21 = vector.broadcast %cst_9 : f32 to vector<16x256xf32>
    %22 = arith.mulf %21, %20 : vector<16x256xf32>
    %23 = arith.mulf %10, %22 : vector<16x256xf32>
    %24 = arith.mulf %9, %23 : vector<16x256xf32>
    %c0_10 = arith.constant 0 : index
    %c0_11 = arith.constant 0 : index
    %25 = vector.load %arg8[%c0_10, %c0_11] : memref<16x64xf32, #tpu.memory_space<vmem>>, vector<16x64xf32>
    %26 = arith.truncf %24 : vector<16x256xf32> to vector<16x256xbf16>
    %c0_12 = arith.constant 0 : index
    %c0_13 = arith.constant 0 : index
    %27 = vector.load %arg5[%c0_12, %c0_13] : memref<256x64xbf16, #tpu.memory_space<vmem>>, vector<256x64xbf16>
    %cst_14 = arith.constant dense<0.000000e+00> : vector<16x64xf32>
    %28 = tpu.matmul %26, %27, %cst_14 {dimension_numbers = #tpu.dot_dimension_numbers<[1], [0], [0], [1], [0, 0, 1, 1], [], []>} : vector<16x256xbf16>, vector<256x64xbf16>, vector<16x64xf32> -> vector<16x64xf32>
    %29 = arith.addf %25, %28 : vector<16x64xf32>
    %c0_15 = arith.constant 0 : index
    %c0_16 = arith.constant 0 : index
    %30 = vector.load %arg8[%c0_15, %c0_16] : memref<16x64xf32, #tpu.memory_space<vmem>>, vector<16x64xf32>
    tpu.vector_store %arg8[%c0_15, %c0_16], %29 {strides = array<i32>} : memref<16x64xf32, #tpu.memory_space<vmem>>, vector<16x64xf32>,
    %c0_i32_17 = arith.constant 0 : i32
    %31 = arith.cmpi eq, %arg1, %c0_i32_17 : i32
    %32 = arith.extui %31 : i1 to i32
    %c0_i32_18 = arith.constant 0 : i32
    %33 = arith.cmpi ne, %32, %c0_i32_18 : i32
    scf.if %33 {
      %c0_19 = arith.constant 0 : index
      %c0_20 = arith.constant 0 : index
      %34 = vector.load %arg8[%c0_19, %c0_20] : memref<16x64xf32, #tpu.memory_space<vmem>>, vector<16x64xf32>
      %c0_21 = arith.constant 0 : index
      %c0_22 = arith.constant 0 : index
      %35 = vector.load %arg7[%c0_21, %c0_22] : memref<16x64xf32, #tpu.memory_space<vmem>>, vector<16x64xf32>
      tpu.vector_store %arg7[%c0_21, %c0_22], %34 {strides = array<i32>} : memref<16x64xf32, #tpu.memory_space<vmem>>, vector<16x64xf32>,
    } else {
    }
    return
  }
  func.func @transform_0(%arg0: i32, %arg1: i32) -> (i32, i32) {
    %c0_i32 = arith.constant 0 : i32
    %c0_i32_0 = arith.constant 0 : i32
    return %arg0, %c0_i32 : i32, i32
  }
  func.func @transform_1(%arg0: i32, %arg1: i32) -> (i32, i32) {
    %c0_i32 = arith.constant 0 : i32
    %c0_i32_0 = arith.constant 0 : i32
    return %c0_i32, %arg1 : i32, i32
  }
  func.func @transform_2(%arg0: i32, %arg1: i32) -> (i32, i32) {
    %c0_i32 = arith.constant 0 : i32
    %c0_i32_0 = arith.constant 0 : i32
    return %c0_i32, %arg1 : i32, i32
  }
  func.func @transform_3(%arg0: i32, %arg1: i32) -> (i32, i32) {
    %c0_i32 = arith.constant 0 : i32
    %c0_i32_0 = arith.constant 0 : i32
    return %arg1, %c0_i32 : i32, i32
  }
  func.func @transform_4(%arg0: i32, %arg1: i32) -> (i32, i32) {
    %c0_i32 = arith.constant 0 : i32
    %c0_i32_0 = arith.constant 0 : i32
    %c0_i32_1 = arith.constant 0 : i32
    return %c0_i32, %c0_i32_0 : i32, i32
  }
  func.func @transform_5(%arg0: i32, %arg1: i32) -> (i32, i32) {
    %c0_i32 = arith.constant 0 : i32
    %c0_i32_0 = arith.constant 0 : i32
    return %arg0, %c0_i32 : i32, i32
  }
}

</mosaic_0001>

<bundles_post_ra>
// kernel: tpu_custom_call.1
= control target key start
LH: loop header
LB: loop body
LE: loop exit
PB: predicated region body
PF: predicated region fallthrough
CT: control target
= control target key end

     0   :  { %v626_v2 = vmov 0   ;;  %vm33_vm0 = vcmask 523264   ;;  %s785_s0 = inlined_call_operand.vmem [shape: bf16[16,64], index: 0, kind: input, shape index: {}]   ;;  %s786_s1 = inlined_call_operand.vmem [shape: bf16[64,512], index: 1, kind: input, shape index: {}]   ;;  %s787_s2 = inlined_call_operand.vmem [shape: f32[1,512], index: 2, kind: input, shape index: {}]   ;;  %s788_s3 = inlined_call_operand.vmem [shape: bf16[256,64], index: 3, kind: input, shape index: {}]   ;;  %s789_s4 = inlined_call_operand.vmem [shape: f32[1,64], index: 4, kind: input, shape index: {}]   ;;  %s790_s5 = inlined_call_operand.hbm [shape: f32[16,64], index: 5, kind: output, shape index: {}]  }
   0x1   :  { %v553_v0 = vld [vmem:[%s786_s1 + $0x4] ss:$16 sps:$4 sm:$0xff]   ;;  %v555_v1 = vld [vmem:[%s786_s1] ss:$16 sps:$4 sm:$0xff]   ;;  %197 = vmatprep.mubr.bf16.mxu1 %v626_v2  ;;  %v568_v9 = vld [vmem:[%s786_s1 + $0xc] ss:$16 sps:$4 sm:$0xff]  }
   0x2   :  { %165 = vmatprep.subr.bf16.mxu1 %v553_v0  ;;  %v556_v3 = vld [vmem:[%s786_s1 + $0x24] ss:$16 sps:$4 sm:$0xff]   ;;  %v558_v4 = vld [vmem:[%s786_s1 + $0x20] ss:$16 sps:$4 sm:$0xff]   ;;  %v566_v11 = vld [vmem:[%s786_s1 + $0x8] ss:$16 sps:$4 sm:$0xff]  }
   0x3   :  { %166 = vmatpush1.bf16.msra.mxu1 %v555_v1  ;;  %v559_v5 = vld [vmem:[%s786_s1 + $0x44] ss:$16 sps:$4 sm:$0xff]   ;;  %v561_v6 = vld [vmem:[%s786_s1 + $0x40] ss:$16 sps:$4 sm:$0xff]   ;;  %v571_v12 = vld [vmem:[%s786_s1 + $0x2c] ss:$16 sps:$4 sm:$0xff]  }
   0x4   :  { %167 = vmatprep.subr.bf16.mxu1 %v556_v3  ;;  %v562_v7 = vld [vmem:[%s786_s1 + $0x64] ss:$16 sps:$4 sm:$0xff]   ;;  %v564_v8 = vld [vmem:[%s786_s1 + $0x60] ss:$16 sps:$4 sm:$0xff]   ;;  %v569_v13 = vld [vmem:[%s786_s1 + $0x28] ss:$16 sps:$4 sm:$0xff]  }
   0x5   :  { %v565_v10 = vld [vmem:[%s785_s0] sm:$0xff]   ;;  %v574_v14 = vld [vmem:[%s786_s1 + $0x4c] ss:$16 sps:$4 sm:$0xff]  }
   0x7   :  { %168 = vmatpush1.bf16.msra.mxu1 %v558_v4 }
   0x8   :  { %169 = vmatprep.subr.bf16.mxu1 %v559_v5 }
   0xb   :  { %170 = vmatpush1.bf16.msra.mxu1 %v561_v6 }
   0xc   :  { %171 = vmatprep.subr.bf16.mxu1 %v562_v7 }
   0xf   :  { %172 = vmatpush1.bf16.msra.mxu1 %v564_v8 }
  0x10   :  { %208 = vmatprep.subr.bf16.mxu1 %v568_v9 }
  0x12   :  { %509 = vmatmul.mubr.msk.bf16.vlgmr.msra.gmra.mrb[0].mxu1 %vm33_vm0, %v565_v10 }
  0x13   :  { %209 = vmatpush1.bf16.msra.mxu1 %v566_v11  ;;  %240 = vmatprep.mubr.bf16.mxu1 %v626_v2 }
  0x14   :  { %210 = vmatprep.subr.bf16.mxu1 %v571_v12 }
  0x15   :  { %10 = vsyncpa [#allocation4], 0  ;;  %v572_v15 = vld [vmem:[%s786_s1 + $0x48] ss:$16 sps:$4 sm:$0xff]   ;;  %v577_v16 = vld [vmem:[%s786_s1 + $0x6c] ss:$16 sps:$4 sm:$0xff]   ;;  %v56_v37 = vlaneseq }
  0x16   :  { %v575_v17 = vld [vmem:[%s786_s1 + $0x68] ss:$16 sps:$4 sm:$0xff]   ;;  %v578_v18 = vld [vmem:[%s788_s3 + $0x40] sm:$0xff]   ;;  %v582_v22 = vld [vmem:[%s788_s3 + $0x50] sm:$0xff]   ;;  %s627_s1 = smov [#allocation3]  }
  0x17   :  { %211 = vmatpush1.bf16.msra.mxu1 %v569_v13  ;;  %v579_v19 = vld [vmem:[%s788_s3] sm:$0xff]   ;;  %527 = vmatprep.subr.bf16.mxu0 %v578_v18  ;;  %v580_v20 = vld [vmem:[%s788_s3 + $0x48] sm:$0xff]   ;;  %v583_v23 = vld [vmem:[%s788_s3 + $0x10] sm:$0xff]   ;;  %v57_v39 = vshrl.u32 %v56_v37, 7 }
  0x18   :  { %212 = vmatprep.subr.bf16.mxu1 %v574_v14  ;;  %528 = vmatpush3.bf16.msra.mxu0 %v579_v19  ;;  %v581_v21 = vld [vmem:[%s788_s3 + $0x8] sm:$0xff]   ;;  %v584_v24 = vld [vmem:[%s788_s3 + $0x58] sm:$0xff]   ;;  %v586_v26 = vld [vmem:[%s788_s3 + $0x60] sm:$0xff]  }
  0x19   :  { %529 = vmatprep.subr.bf16.mxu0 %v580_v20  ;;  %v585_v25 = vld [vmem:[%s788_s3 + $0x18] sm:$0xff]   ;;  %v587_v27 = vld [vmem:[%s788_s3 + $0x20] sm:$0xff]   ;;  %v588_v28 = vld [vmem:[%s788_s3 + $0x68] sm:$0xff]   ;;  %v66_v40 = vsub.s32 2, %v57_v39  ;;  %v70_v41 = vsub.s32 3, %v57_v39  ;;  %v58_v9 = vsub.s32 0, %v57_v39 }
  0x1a   :  { %v589_v29 = vld [vmem:[%s788_s3 + $0x28] sm:$0xff]   ;;  %v590_v30 = vld [vmem:[%s788_s3 + $0x70] sm:$0xff]   ;;  %v592_v32 = vld [vmem:[%s788_s3 + $0x78] sm:$0xff]  }
  0x1b   :  { %213 = vmatpush1.bf16.msra.mxu1 %v572_v15  ;;  %v591_v31 = vld [vmem:[%s788_s3 + $0x30] sm:$0xff]   ;;  %v593_v33 = vld [vmem:[%s788_s3 + $0x38] sm:$0xff]   ;;  %v54_v42 = vld [vmem:[%s787_s2] sm:$0xf] }
  0x1c   :  { %214 = vmatprep.subr.bf16.mxu1 %v577_v16  ;;  %530 = vmatpush3.bf16.msra.mxu0 %v581_v21  ;;  %v67_v43 = vrot.slane %v54_v42, %v66_v40  ;;  %v71_v44 = vrot.slane %v54_v42, %v70_v41  ;;  %v59_v13 = vrot.slane %v54_v42, %v58_v9 }
  0x1d   :  { %531 = vmatprep.subr.bf16.mxu0 %v582_v22 }
  0x1f   :  { %215 = vmatpush1.bf16.msra.mxu1 %v575_v17 }
  0x20   :  { %532 = vmatpush3.bf16.msra.mxu0 %v583_v23 }
  0x21   :  { %533 = vmatprep.subr.bf16.mxu0 %v584_v24 }
  0x22   :  { %510 = vmatmul.mubr.msk.bf16.vlgmr.msra.gmra.mrb[4].mxu1 %vm33_vm0, %v565_v10  ;;  %v62_v10 = vsub.s32 1, %v57_v39 }
  0x24   :  { %534 = vmatpush3.bf16.msra.mxu0 %v585_v25  ;;  %v63_v16 = vrot.slane %v54_v42, %v62_v10 }
  0x25   :  { %535 = vmatprep.subr.bf16.mxu0 %v586_v26 }
  0x28   :  { %536 = vmatpush3.bf16.msra.mxu0 %v587_v27 }
  0x29   :  { %537 = vmatprep.subr.bf16.mxu0 %v588_v28 }
  0x2c   :  { %538 = vmatpush3.bf16.msra.mxu0 %v589_v29 }
  0x2d   :  { %539 = vmatprep.subr.bf16.mxu0 %v590_v30 }
  0x30   :  { %540 = vmatpush3.bf16.msra.mxu0 %v591_v31 }
  0x31   :  { %541 = vmatprep.subr.bf16.mxu0 %v592_v32 }
  0x34   :  { %542 = vmatpush3.bf16.msra.mxu0 %v593_v33 }
  0xe5   :  { %v199_v34 = vpop.f32.mrb[0].mxu1 }
  0xe6   :  { %v201_v35 = vpop.f32.mrb[1].mxu1  ;;  %v200_v23 = vadd.f32 %v199_v34, %v59_v13  ;;  %v491_v34 = vld [vmem:[%s789_s4] ss:$0 sm:$0xff]  ;;  %s480_s4 = sshll.u32 %s627_s1, 4  ;;  %s481_s4 = int_to_ptr.vmem [resolvable:$true] %s480_s4 }
  0xe7   :  { %v203_v36 = vpop.f32.mrb[2].mxu1  ;;  %v202_v26 = vadd.f32 %v201_v35, %v63_v16  ;;  %34 = vst.msk [vmem:[#allocation2] sm:$0xff] %vm33_vm0, %v491_v34  ;;  %35 = vst.msk [vmem:[#allocation2 + $0x8] sm:$0xff] %vm33_vm0, %v491_v34  ;;  %s602_s8 = scalar_lea.vmem %s481_s4, 256  ;;  %p607_p1 = scmp.lt.s32.totalorder %s481_s4, %s481_s4 }
  0xe8   :  { %v205_v38 = vpop.f32.mrb[3].mxu1  ;;  %v204_v29 = vadd.f32 %v203_v36, %v59_v13  ;;  %p603_p0 = scmp.ne.s32.totalorder %s481_s4, %s602_s8  ;;  %p608_p2 = scmp.lt.s32.totalorder %s602_s8, %s602_s8 }
  0xe9   :  { %v206_v32 = vadd.f32 %v205_v38, %v63_v16 }
  0xea   :  { %p609_p3 = por %p608_p2, %p607_p1 }
  0xec   :  { %p610_p4 = pnand %p609_p3, %p603_p0 }
  0xee   :  { %v291_v36 = vld [vmem:[#allocation2] sm:$0xff] }
  0xf5   :  { %v242_v45 = vpop.f32.mrb[4].mxu1 }
  0xf6   :  { %v243_v46 = vadd.f32 %v242_v45, %v67_v43  ;;  %v244_v47 = vpop.f32.mrb[5].mxu1  ;;  %v292_v45 = vld [vmem:[#allocation2 + $0x8] sm:$0xff] }
  0xf7   :  { %v245_v48 = vadd.f32 %v244_v47, %v71_v44  ;;  %v246_v49 = vpop.f32.mrb[6].mxu1 }
  0xf8   :  { %v251_v50 = vmul.f32 %v243_v46, %v243_v46  ;;  %v247_v51 = vadd.f32 %v246_v49, %v67_v43  ;;  %v248_v52 = vpop.f32.mrb[7].mxu1 }
  0xf9   :  { %v252_v53 = vmul.f32 %v245_v48, %v245_v48  ;;  %v249_v54 = vadd.f32 %v248_v52, %v71_v44 }
  0xfa   :  { %v255_v55 = vmul.f32 %v251_v50, %v243_v46  ;;  %v253_v56 = vmul.f32 %v247_v51, %v247_v51 }
  0xfb   :  { %v256_v57 = vmul.f32 %v252_v53, %v245_v48  ;;  %v254_v58 = vmul.f32 %v249_v54, %v249_v54 }
  0xfc   :  { %v259_v59 = vmul.f32 0.044715, %v255_v55  ;;  %v257_v60 = vmul.f32 %v253_v56, %v247_v51 }
  0xfd   :  { %v260_v61 = vmul.f32 0.044715, %v256_v57  ;;  %v258_v62 = vmul.f32 %v254_v58, %v249_v54 }
  0xfe   :  { %v263_v63 = vadd.f32 %v259_v59, %v243_v46  ;;  %v261_v0 = vmul.f32 0.044715, %v257_v60 }
  0xff   :  { %v264_v1 = vadd.f32 %v260_v61, %v245_v48  ;;  %v262_v2 = vmul.f32 0.044715, %v258_v62 }
 0x100   :  { %v267_v3 = vmul.f32 0.7978846, %v263_v63  ;;  %v265_v4 = vadd.f32 %v261_v0, %v247_v51 }
 0x101   :  { %v268_v5 = vmul.f32 0.7978846, %v264_v1  ;;  %v266_v6 = vadd.f32 %v262_v2, %v249_v54 }
 0x102   :  { %594 = vtanh.f32 %v267_v3  ;;  %v269_v7 = vmul.f32 0.7978846, %v265_v4 }
 0x103   :  { %v270_v8 = vmul.f32 0.7978846, %v266_v6  ;;  %596 = vtanh.f32 %v268_v5 }
 0x104   :  { %598 = vtanh.f32 %v269_v7 }
 0x105   :  { %600 = vtanh.f32 %v270_v8 }
 0x10c   :  { %v595_v11 = vpop.eup %594 }
 0x10d   :  { %v597_v12 = vpop.eup %596  ;;  %v275_v14 = vadd.f32 1.0, %v595_v11 }
 0x10e   :  { %v599_v15 = vpop.eup %598  ;;  %v276_v17 = vadd.f32 1.0, %v597_v12 }
 0x10f   :  { %v601_v18 = vpop.eup %600  ;;  %v277_v19 = vadd.f32 1.0, %v599_v15  ;;  %v279_v20 = vmul.f32 0.5, %v275_v14 }
 0x110   :  { %v278_v21 = vadd.f32 1.0, %v601_v18  ;;  %v280_v22 = vmul.f32 0.5, %v276_v17 }
 0x111   :  { %v281_v24 = vmul.f32 0.5, %v277_v19  ;;  %v283_v25 = vmul.f32 %v279_v20, %v243_v46 }
 0x112   :  { %v282_v27 = vmul.f32 0.5, %v278_v21  ;;  %v284_v28 = vmul.f32 %v280_v22, %v245_v48 }
 0x113   :  { %v285_v30 = vmul.f32 %v281_v24, %v247_v51  ;;  %v287_v31 = vmul.f32 %v283_v25, %v200_v23 }
 0x114   :  { %v286_v33 = vmul.f32 %v282_v27, %v249_v54  ;;  %v288_v37 = vmul.f32 %v284_v28, %v202_v26 }
 0x115   :  { %v289_v39 = vmul.f32 %v285_v30, %v204_v29 }
 0x116   :  { %v290_v40 = vmul.f32 %v286_v33, %v206_v32 }
 0x117   :  { %v293_v41 = vpack.c.bf16 %v289_v39, %v287_v31 }
 0x118   :  { %v294_v42 = vpack.c.bf16 %v290_v40, %v288_v37 }
 0x11a   :  { %455 = vmatprep.mubr.bf16.mxu0 %v294_v42 }
 0x11b   :  { %456 = vmatmul.mubr.bf16.vlgmr.msra.gmra.mrb[0].mxu0 %v293_v41 }
 0x1ee   :  { %v543_v35 = vpop.f32.mrb[0].mxu0 }
 0x1ef   :  { %v544_v43 = vpop.f32.mrb[1].mxu0 }
 0x1f0   :  { %v545_v38 = vadd.f32 %v544_v43, %v543_v35  ;;  %v546_v44 = vpop.f32.mrb[2].mxu0 }
 0x1f1   :  { %v547_v46 = vpop.f32.mrb[3].mxu0 }
 0x1f2   :  { %v464_v47 = vadd.f32 %v545_v38, %v291_v36  ;;  %v548_v48 = vadd.f32 %v547_v46, %v546_v44 }
 0x1f4   :  { %466 = vst.msk [vmem:[#allocation2] sm:$0xff] %vm33_vm0, %v464_v47  ;;  %v465_v49 = vadd.f32 %v548_v48, %v292_v45 }
 0x1f6   :  { %467 = vst.msk [vmem:[#allocation2 + $0x8] sm:$0xff] %vm33_vm0, %v465_v49 }
 0x1fb   :  { %v471_v50 = vld [vmem:[#allocation2] sm:$0xff] }
 0x1fc   :  { %473 = vst.msk [vmem:[#allocation3] sm:$0xff] %vm33_vm0, %v471_v50 }
 0x1fd   :  { %v472_v51 = vld [vmem:[#allocation2 + $0x8] sm:$0xff] }
 0x1fe   :  { %474 = vst.msk [vmem:[#allocation3 + $0x8] sm:$0xff] %vm33_vm0, %v472_v51 }
 0x1ff   :  { %613 = shalt.err (!%p610_p4)
}
 0x200   :  { %s614_s11 = scalar_lea.hbm %s790_s5, 256 }
 0x201   :  { %p615_p5 = scmp.ne.s32.totalorder %s790_s5, %s614_s11  ;;  %p618_p6 = scmp.lt.u32.totalorder %s614_s11, %s790_s5 }
 0x203   :  { %p620_p7 = pnand %p618_p6, %p615_p5 }
 0x205   :  { %623 = shalt.err (!%p620_p7)
}
 0x206   :  { %s628_s16 = smov 128   ;;  %s629_s17 = smov 8  }
 0x207   :  { %486 = dma.vmem_to_hbm [thread:$0]  %s481_s4, 256, %s790_s5, [#allocation4], %s628_s16, %s628_s16, %s629_s17  }
 0x208   :  { %624 = dma.done.wait [#allocation4], 256  }
 0x209   :  { %625 = vsyncadd [#allocation4], 4294967040 }
 0x20a   :  { %490 = vsyncpa [#allocation4], 1 }

</bundles_post_ra>
